<compile_context>
chip_gen: v5e
topology: v5e:2x2
jax: 0.10.0
libtpu: 0.0.40
codegen_flags: <defaults>
</compile_context>

<pallas_src>
import jax
import jax.numpy as jnp
from jax.experimental import pallas as pl
from jax.experimental.pallas import tpu as pltpu


# ----------------------------------------------------------------------------
# Kernel: forward(x) = fc2(relu(fc(x)))
# ----------------------------------------------------------------------------
def mlp_kernel(x_ref, w1_ref, b1_ref, w2_ref, b2_ref, o_ref):
    # fc: x @ W1 + b1 -> ReLU. bf16 operands, f32 accumulation on the MXU.
    x = x_ref[...].astype(w1_ref.dtype)
    h = jnp.dot(x, w1_ref[...], preferred_element_type=jnp.float32)
    h = jnp.maximum(h + b1_ref[...], 0.0)            # implicit (1,H)+(B,H) broadcast
    # fc2: h @ W2 + b2. Output last dim is the full (unpadded) n_actions.
    out = jnp.dot(h.astype(w2_ref.dtype), w2_ref[...],
                  preferred_element_type=jnp.float32)
    o_ref[...] = (out + b2_ref[...]).astype(o_ref.dtype)


# ----------------------------------------------------------------------------
# One-time parameter preparation (hoisted out of the per-call forward).
# ----------------------------------------------------------------------------
def prepare_params(w1, b1, w2, b2, *, compute_dtype=jnp.bfloat16):
    """Weights stored [in, out] (transposed vs torch.nn.Linear) and cast to
    bf16 once; biases stay f32 (added to the f32 accumulator)."""
    return (
        w1.astype(compute_dtype),
        b1.reshape(1, -1).astype(jnp.float32),
        w2.astype(compute_dtype),
        b2.reshape(1, -1).astype(jnp.float32),
    )


# ----------------------------------------------------------------------------
# Forward wrapper
# ----------------------------------------------------------------------------
def neural_network_forward(x, w1, b1, w2, b2, *,
                           batch_tile=1024, single_shot_max=4096):
    """Pallas equivalent of NeuralNetwork.forward: fc2(relu(fc(x)))."""
    B, obs_dim = x.shape
    hidden = w1.shape[1]
    n_actions = w2.shape[1]
    out_dtype = x.dtype

    def cost(rows):
        flops = 2 * rows * (obs_dim * hidden + hidden * n_actions)
        bytes_acc = (rows * obs_dim * x.dtype.itemsize
                     + w1.size * w1.dtype.itemsize + b1.size * 4
                     + w2.size * w2.dtype.itemsize + b2.size * 4
                     + rows * n_actions * jnp.dtype(out_dtype).itemsize)
        return pl.CostEstimate(flops=flops, transcendentals=0,
                               bytes_accessed=bytes_acc)

    # Working set is ~1.2 KiB/row + ~36 KiB of bf16 weights, so a few thousand
    # rows easily fit VMEM on all generations -> prefer the no-grid path.
    if B <= max(single_shot_max, batch_tile):
        Bp = max(8, ((B + 7) // 8) * 8)              # sublane-friendly batch
        xp = x if Bp == B else jnp.zeros((Bp, obs_dim), x.dtype).at[:B].set(x)
        out = pl.pallas_call(
            mlp_kernel,
            out_shape=jax.ShapeDtypeStruct((Bp, n_actions), out_dtype),
            in_specs=[pl.BlockSpec(memory_space=pltpu.MemorySpace.VMEM)] * 5,
            out_specs=pl.BlockSpec(memory_space=pltpu.MemorySpace.VMEM),
            cost_estimate=cost(Bp),
        )(xp, w1, b1, w2, b2)
        return out[:B] if Bp != B else out

    # ---- batch-tiled path: "parallel" grid over batch (>=2 tiles guaranteed;
    #      shards across both TensorCores on v7x, serial on v5e/v6e). ----
    Bp = ((B + batch_tile - 1) // batch_tile) * batch_tile
    xp = x if Bp == B else jnp.zeros((Bp, obs_dim), x.dtype).at[:B].set(x)
    n_tiles = Bp // batch_tile

    # Explicit VMEM budget so a large tile also compiles on v5e (16 MiB default
    # scoped VMEM): double-buffered x/out tiles + resident weights + f32
    # intermediates, with headroom.
    per_tile = (2 * batch_tile * obs_dim * x.dtype.itemsize            # x (2 bufs)
                + 2 * batch_tile * n_actions * jnp.dtype(out_dtype).itemsize  # out (2 bufs)
                + batch_tile * hidden * 4                               # f32 h
                + batch_tile * (obs_dim + hidden) * 2)                  # bf16 casts
    weights = 2 * (w1.size * w1.dtype.itemsize + w2.size * w2.dtype.itemsize
                   + (b1.size + b2.size) * 4)
    vmem_limit = int(per_tile + weights + (4 << 20))

    out = pl.pallas_call(
        mlp_kernel,
        out_shape=jax.ShapeDtypeStruct((Bp, n_actions), out_dtype),
        grid=(n_tiles,),
        in_specs=[
            pl.BlockSpec((batch_tile, obs_dim), lambda i: (i, 0)),   # x tile
            pl.BlockSpec((obs_dim, hidden),     lambda i: (0, 0)),   # W1 (resident)
            pl.BlockSpec((1, hidden),           lambda i: (0, 0)),   # b1 (resident)
            pl.BlockSpec((hidden, n_actions),   lambda i: (0, 0)),   # W2 (resident)
            pl.BlockSpec((1, n_actions),        lambda i: (0, 0)),   # b2 (resident)
        ],
        out_specs=pl.BlockSpec((batch_tile, n_actions), lambda i: (i, 0)),
        compiler_params=pltpu.CompilerParams(
            dimension_semantics=("parallel",),
            vmem_limit_bytes=vmem_limit,
        ),
        cost_estimate=cost(Bp),
    )(xp, w1, b1, w2, b2)
    return out[:B] if Bp != B else out


if __name__ == "__main__":
    # Shapes consistent with the module: obs_dim -> 128 -> n_actions.
    obs_dim = 16       # env.observation_space.n
    hidden = 128       # fixed in the module
    n_actions = 8      # env.action_space.n

    key = jax.random.PRNGKey(0)
    kx, k1, kb1, k2, kb2, kx2 = jax.random.split(key, 6)

    # Deterministic init matching torch.nn.Linear's U(-1/sqrt(fan_in), ...).
    bound1 = 1.0 / jnp.sqrt(obs_dim)
    bound2 = 1.0 / jnp.sqrt(hidden)
    w1 = jax.random.uniform(k1, (obs_dim, hidden), jnp.float32, -bound1, bound1)
    b1 = jax.random.uniform(kb1, (hidden,), jnp.float32, -bound1, bound1)
    w2 = jax.random.uniform(k2, (hidden, n_actions), jnp.float32, -bound2, bound2)
    b2 = jax.random.uniform(kb2, (n_actions,), jnp.float32, -bound2, bound2)

    # One-time parameter prep (hoisted out of the forward).
    params = prepare_params(w1, b1, w2, b2)

    # jit the whole forward so the x zero-pad and row slice fuse with neighbors.
    fwd = jax.jit(lambda x: neural_network_forward(x, *params))
    fwd_tiled = jax.jit(lambda x: neural_network_forward(
        x, *params, batch_tile=1024, single_shot_max=1024))

    # References: exact f32, and a bf16-consistent one matching kernel precision.
    def ref_f32(x):
        return jnp.maximum(x @ w1 + b1, 0.0) @ w2 + b2

    def ref_bf16(x):
        w1b, b1r, w2b, b2r = params
        h = jnp.dot(x.astype(jnp.bfloat16), w1b, preferred_element_type=jnp.float32)
        h = jnp.maximum(h + b1r, 0.0)
        o = jnp.dot(h.astype(jnp.bfloat16), w2b, preferred_element_type=jnp.float32)
        return o + b2r

    # 1) small batch -> single-shot (no-grid) path
    x_small = jax.random.normal(kx, (8, obs_dim), dtype=jnp.float32)
    out_small = jax.block_until_ready(fwd(x_small))
    assert out_small.shape == (8, n_actions)
    assert jnp.allclose(out_small, ref_bf16(x_small), atol=1e-3, rtol=1e-3)
    assert jnp.allclose(out_small, ref_f32(x_small), atol=3e-2, rtol=3e-2)

    # 2) larger batch -> batch-tiled ("parallel" grid, 2 tiles) path
    x_big = jax.random.normal(kx2, (2048, obs_dim), dtype=jnp.float32)
    out_big = jax.block_until_ready(fwd_tiled(x_big))
    assert out_big.shape == (2048, n_actions)
    assert jnp.allclose(out_big, ref_bf16(x_big), atol=1e-3, rtol=1e-3)
    assert jnp.allclose(out_big, ref_f32(x_big), atol=3e-2, rtol=3e-2)

    print("KERNEL_OK")
</pallas_src>

<mosaic_0001>
module attributes {stable_mosaic.version = 11 : i64} {
  func.func @mlp_kernel(%arg0: memref<8x16xf32, #tpu.memory_space<vmem>>, %arg1: memref<16x128xbf16, #tpu.memory_space<vmem>>, %arg2: memref<1x128xf32, #tpu.memory_space<vmem>>, %arg3: memref<128x8xbf16, #tpu.memory_space<vmem>>, %arg4: memref<1x8xf32, #tpu.memory_space<vmem>>, %arg5: memref<8x8xf32, #tpu.memory_space<vmem>>) attributes {dimension_semantics = [], scalar_prefetch = 0 : i64, scratch_operands = 0 : i64, tpu.core_type = #tpu.core_type<tc>} {
    %c0 = arith.constant 0 : index
    %c0_0 = arith.constant 0 : index
    %0 = vector.load %arg0[%c0, %c0_0] : memref<8x16xf32, #tpu.memory_space<vmem>>, vector<8x16xf32>
    %1 = arith.truncf %0 : vector<8x16xf32> to vector<8x16xbf16>
    %c0_1 = arith.constant 0 : index
    %c0_2 = arith.constant 0 : index
    %2 = vector.load %arg1[%c0_1, %c0_2] : memref<16x128xbf16, #tpu.memory_space<vmem>>, vector<16x128xbf16>
    %cst = arith.constant dense<0.000000e+00> : vector<8x128xf32>
    %3 = tpu.matmul %1, %2, %cst {dimension_numbers = #tpu.dot_dimension_numbers<[1], [0], [0], [1], [0, 0, 1, 1], [], []>} : vector<8x16xbf16>, vector<16x128xbf16>, vector<8x128xf32> -> vector<8x128xf32>
    %c0_3 = arith.constant 0 : index
    %c0_4 = arith.constant 0 : index
    %4 = vector.load %arg2[%c0_3, %c0_4] : memref<1x128xf32, #tpu.memory_space<vmem>>, vector<1x128xf32>
    %5 = vector.broadcast %4 : vector<1x128xf32> to vector<8x128xf32>
    %6 = arith.addf %3, %5 : vector<8x128xf32>
    %cst_5 = arith.constant 0.000000e+00 : f32
    %7 = vector.broadcast %cst_5 : f32 to vector<8x128xf32>
    %8 = arith.maximumf %6, %7 : vector<8x128xf32>
    %9 = arith.truncf %8 : vector<8x128xf32> to vector<8x128xbf16>
    %c0_6 = arith.constant 0 : index
    %c0_7 = arith.constant 0 : index
    %10 = vector.load %arg3[%c0_6, %c0_7] : memref<128x8xbf16, #tpu.memory_space<vmem>>, vector<128x8xbf16>
    %cst_8 = arith.constant dense<0.000000e+00> : vector<8x8xf32>
    %11 = tpu.matmul %9, %10, %cst_8 {dimension_numbers = #tpu.dot_dimension_numbers<[1], [0], [0], [1], [0, 0, 1, 1], [], []>} : vector<8x128xbf16>, vector<128x8xbf16>, vector<8x8xf32> -> vector<8x8xf32>
    %c0_9 = arith.constant 0 : index
    %c0_10 = arith.constant 0 : index
    %12 = vector.load %arg4[%c0_9, %c0_10] : memref<1x8xf32, #tpu.memory_space<vmem>>, vector<1x8xf32>
    %13 = vector.broadcast %12 : vector<1x8xf32> to vector<8x8xf32>
    %14 = arith.addf %11, %13 : vector<8x8xf32>
    %c0_11 = arith.constant 0 : index
    %c0_12 = arith.constant 0 : index
    %15 = vector.load %arg5[%c0_11, %c0_12] : memref<8x8xf32, #tpu.memory_space<vmem>>, vector<8x8xf32>
    tpu.vector_store %arg5[%c0_11, %c0_12], %14 {strides = array<i32>} : memref<8x8xf32, #tpu.memory_space<vmem>>, vector<8x8xf32>,
    return
  }
}

</mosaic_0001>

<bundles_post_ra>
// kernel: _lambda_.1
= control target key start
LH: loop header
LB: loop body
LE: loop exit
PB: predicated region body
PF: predicated region fallthrough
CT: control target
= control target key end

     0   :  { %10 = vsyncpa [#allocation3], 0  ;;  %s454_s0 = inlined_call_operand.hbm [shape: f32[8,16], index: 0, kind: input, shape index: {}]   ;;  %s455_s1 = inlined_call_operand.hbm [shape: bf16[16,128], index: 1, kind: input, shape index: {}]   ;;  %s456_s2 = inlined_call_operand.hbm [shape: f32[1,128], index: 2, kind: input, shape index: {}]   ;;  %s457_s3 = inlined_call_operand.hbm [shape: bf16[128,8], index: 3, kind: input, shape index: {}]   ;;  %s458_s4 = inlined_call_operand.vmem [shape: f32[1,8], index: 4, kind: input, shape index: {}]   ;;  %s459_s5 = inlined_call_operand.hbm [shape: f32[8,8], index: 5, kind: output, shape index: {}]  }
   0x1   :  { %11 = vsyncpa [#allocation6], 0 }
   0x2   :  { %12 = vsyncpa [#allocation9], 0  ;;  %s29_s20 = sshll.u32 %s455_s1, 4  ;;  %s30_s20 = int_to_ptr.hbm [resolvable:$true] %s29_s20 }
   0x3   :  { %13 = vsyncpa [#allocation4], 0  ;;  %s399_s21 = smov [#allocation5]   ;;  %s19_s25 = sshll.u32 %s454_s0, 4  ;;  %s20_s25 = int_to_ptr.hbm [resolvable:$true] %s19_s25 }
   0x4   :  { %s31_s22 = sshll.u32 %s399_s21, 4  ;;  %s400_s26 = smov 64   ;;  %s32_s22 = int_to_ptr.vmem [resolvable:$true] %s31_s22 }
   0x5   :  { %s401_s27 = smov 4   ;;  %s402_s28 = smov [#allocation2]  }
   0x6   :  { %37 = dma.hbm_to_vmem [thread:$0]  %s30_s20, 128, %s32_s22, [#allocation6], %s400_s26, %s400_s26, %s401_s27  }
   0x7   :  { %s21_s29 = sshll.u32 %s402_s28, 4  ;;  %s43_s7 = sshll.u32 %s456_s2, 4  ;;  %s22_s29 = int_to_ptr.vmem [resolvable:$true] %s21_s29  ;;  %s44_s7 = int_to_ptr.hbm [resolvable:$true] %s43_s7 }
   0x8   :  { %24 = dma.hbm_to_vmem [thread:$0]  %s20_s25, 128, %s22_s29, [#allocation3]  }
   0x9   :  { %s53_s9 = sshll.u32 %s457_s3, 4  ;;  %s403_s10 = smov [#allocation7]   ;;  %s54_s9 = int_to_ptr.hbm [resolvable:$true] %s53_s9 }
   0xa   :  { %s45_s11 = sshll.u32 %s403_s10, 4  ;;  %s404_s0 = smov [#allocation8]   ;;  %s46_s11 = int_to_ptr.vmem [resolvable:$true] %s45_s11 }
   0xb   :  { %48 = dma.hbm_to_vmem [thread:$0]  %s44_s7, 16, %s46_s11, [#allocation6]  }
   0xc   :  { %s55_s12 = sshll.u32 %s404_s0, 4  ;;  %s56_s12 = int_to_ptr.vmem [resolvable:$true] %s55_s12 }
   0xd   :  { %61 = dma.hbm_to_vmem [thread:$0]  %s54_s9, 1024, %s56_s12, [#allocation9], %s400_s26, %s400_s26, %s401_s27  }
   0xe   :  { %391 = dma.done.wait [#allocation3], 128  }
   0xf   :  { %392 = vsyncadd [#allocation3], 4294967168 }
  0x10   :  { %393 = dma.done.wait [#allocation6], 144  }
  0x11   :  { %394 = vsyncadd [#allocation6], 4294967152 }
  0x12   :  { %395 = dma.done.wait [#allocation9], 1024  }
  0x13   :  { %396 = vsyncadd [#allocation9], 4294966272  ;;  %v253_v0 = vld [vmem:[#allocation5] sm:$0xff]  ;;  %v81_v1 = vld [vmem:[#allocation2] sm:$0xff]  ;;  %vm95_vm0 = vcmask 130048   ;;  %s405_s13 = smov [#allocation10]  }
  0x14   :  { %v261_v2 = vld [vmem:[#allocation8 + $0x38] sm:$0xff]  ;;  %v82_v3 = vpack.c.bf16 %v81_v1, %v81_v1  ;;  %106 = vmatpush.bf16.msra.mxu0 %v253_v0  ;;  %v260_v4 = vld [vmem:[#allocation8 + $0x30] sm:$0xff]  ;;  %v259_v5 = vld [vmem:[#allocation8 + $0x28] sm:$0xff]  ;;  %s202_s14 = sshll.u32 %s405_s13, 4  ;;  %s204_s17 = sshll.u32 %s459_s5, 4  ;;  %vm195_vm1 = vcmask 64512   ;;  %s203_s14 = int_to_ptr.vmem [resolvable:$true] %s202_s14  ;;  %s205_s17 = int_to_ptr.hbm [resolvable:$true] %s204_s17 }
  0x15   :  { %182 = vmatpush.bf16.msra.mxu1 %v261_v2  ;;  %v258_v6 = vld [vmem:[#allocation8 + $0x20] sm:$0xff]  ;;  %v257_v7 = vld [vmem:[#allocation8 + $0x18] sm:$0xff]  ;;  %v256_v8 = vld [vmem:[#allocation8 + $0x10] sm:$0xff] }
  0x16   :  { %v255_v9 = vld [vmem:[#allocation8 + $0x8] sm:$0xff]  ;;  %v254_v10 = vld [vmem:[#allocation8] sm:$0xff]  ;;  %v269_v11 = vld [vmem:[#allocation7] ss:$0 sm:$0xff] }
  0x17   :  { %220 = vmatmul.msk.bf16.vlgmr.msra.gmra.mxu0 %vm95_vm0, %v82_v3  ;;  %v270_v17 = vld [vmem:[%s458_s4] ss:$0 sm:$0xff] }
  0x19   :  { %183 = vmatpush.bf16.msra.mxu1 %v260_v4 }
  0x1d   :  { %184 = vmatpush.bf16.msra.mxu1 %v259_v5 }
  0x21   :  { %185 = vmatpush.bf16.msra.mxu1 %v258_v6 }
  0x25   :  { %186 = vmatpush.bf16.msra.mxu1 %v257_v7 }
  0x29   :  { %187 = vmatpush.bf16.msra.mxu1 %v256_v8 }
  0x2d   :  { %188 = vmatpush.bf16.msra.mxu1 %v255_v9 }
  0x31   :  { %189 = vmatpush.bf16.msra.mxu1 %v254_v10 }
  0x94   :  { %v108_v12 = vpop.f32.mrf.mxu0 }
  0x95   :  { %v109_v13 = vadd.f32 %v269_v11, %v108_v12 }
  0x97   :  { %v112_v14 = vmax.f32 %v109_v13, 0.0 }
  0x99   :  { %v113_v15 = vpack.c.bf16 %v112_v14, %v112_v14 }
  0x9b   :  { %190 = vmatmul.bf16.vlgmr.msra.gmra.mxu1 %v113_v15 }
  0x9c   :  { %v110_v16 = vpop.f32.mrf.mxu0 }
 0x118   :  { %v191_v18 = vpop.f32.mrf.mxu1 }
 0x119   :  { %v192_v19 = vadd.f32 %v270_v17, %v191_v18 }
 0x11b   :  { %196 = vst.msk [vmem:[#allocation10] sm:$0xff] %vm195_vm1, %v192_v19 }
 0x11c   :  { %207 = dma.vmem_to_hbm [thread:$0]  %s203_s14, 128, %s205_s17, [#allocation4]  }
 0x120   :  { %v193_v20 = vpop.f32.mrf.mxu1 }
 0x121   :  { %397 = dma.done.wait [#allocation4], 128  }
 0x122   :  { %398 = vsyncadd [#allocation4], 4294967168 }
 0x123   :  { %212 = vsyncpa [#allocation3], 1 }
 0x124   :  { %213 = vsyncpa [#allocation6], 1 }
 0x125   :  { %214 = vsyncpa [#allocation9], 1 }
 0x126   :  { %215 = vsyncpa [#allocation4], 1 }

</bundles_post_ra>
